<compile_context>
chip_gen: v7x
topology: tpu7x:2x2x1
jax: 0.10.0
libtpu: 0.0.40
codegen_flags: <defaults>
</compile_context>

<pallas_src>
import math
import functools

import jax
import jax.numpy as jnp
from jax.experimental import pallas as pl
from jax.experimental.pallas import tpu as pltpu

LANE = 128


def _round_up(x, m):
    return (x + m - 1) // m * m


def _pad_to(a, shape):
    pads = [(0, s - d) for d, s in zip(a.shape, shape)]
    return jnp.pad(a, pads)


def _vmem_limit_bytes():
    # ~75% of physical VMEM: ~96 MiB on v5e/v6e (128 MiB), ~48 MiB on v7x (64 MiB).
    try:
        cap = int(pltpu.get_tpu_info().vmem_capacity_bytes)
        return min(cap * 3 // 4, 100 * 1024 * 1024)
    except Exception:
        return 48 * 1024 * 1024


# ----------------------------------------------------------------------------- kernels

def _linear_kernel(x_ref, w_ref, b_ref, out_ref, *, relu):
    # bf16 matmul inputs, f32 accumulation; bias/activation in f32.
    y = jnp.dot(x_ref[...].astype(jnp.bfloat16), w_ref[...],
                preferred_element_type=jnp.float32)
    y = y + b_ref[...]
    out_ref[...] = jnp.maximum(y, 0.0) if relu else y


def _gcn2_layer_kernel(adj_ref, h_ref, x0_ref, w_ref, out_ref, acc_ref, *, alpha):
    # grid = (row tiles [parallel], adjacency-column reduction tiles [arbitrary])
    @pl.when(pl.program_id(1) == 0)
    def _():
        acc_ref[...] = alpha * x0_ref[...]            # fold the initial-residual add into init

    # A_s is pre-scaled by (1 - alpha) in the wrapper; bf16 x bf16 -> f32 accumulate.
    acc_ref[...] += jnp.dot(adj_ref[...], h_ref[...].astype(jnp.bfloat16),
                            preferred_element_type=jnp.float32)

    @pl.when(pl.program_id(1) == pl.num_programs(1) - 1)
    def _():
        # W' already contains (1-beta)*I + beta*Wc, so a single matmul + relu finishes the layer.
        hw = jnp.dot(acc_ref[...].astype(jnp.bfloat16), w_ref[...],
                     preferred_element_type=jnp.float32)
        out_ref[...] = jnp.maximum(hw, 0.0)


# ----------------------------------------------------------------------------- pallas_call wrappers

def _linear(x, w_bf16, b_f32, *, relu, tm, vmem_limit):
    n_pad, kdim = x.shape
    hdim = w_bf16.shape[1]
    return pl.pallas_call(
        functools.partial(_linear_kernel, relu=relu),
        out_shape=jax.ShapeDtypeStruct((n_pad, hdim), jnp.float32),
        grid_spec=pltpu.PrefetchScalarGridSpec(
            num_scalar_prefetch=0,
            grid=(n_pad // tm,),
            in_specs=[
                pl.BlockSpec((tm, kdim), lambda m: (m, 0)),
                pl.BlockSpec((kdim, hdim), lambda m: (0, 0)),   # resident weight
                pl.BlockSpec((1, hdim), lambda m: (0, 0)),      # resident bias
            ],
            out_specs=pl.BlockSpec((tm, hdim), lambda m: (m, 0)),
        ),
        compiler_params=pltpu.CompilerParams(
            dimension_semantics=("parallel",),
            vmem_limit_bytes=vmem_limit,
        ),
    )(x, w_bf16, b_f32)


def _gcn2_layer(adj_bf16, h, x0, wfold_bf16, *, alpha, tm, tk, vmem_limit):
    n_pad, hdim = h.shape
    return pl.pallas_call(
        functools.partial(_gcn2_layer_kernel, alpha=alpha),
        out_shape=jax.ShapeDtypeStruct((n_pad, hdim), jnp.float32),
        grid_spec=pltpu.PrefetchScalarGridSpec(
            num_scalar_prefetch=0,
            grid=(n_pad // tm, n_pad // tk),
            in_specs=[
                pl.BlockSpec((tm, tk), lambda m, k: (m, k)),    # adjacency tile (double-buffered)
                pl.BlockSpec((tk, hdim), lambda m, k: (k, 0)),  # h rows feeding this K tile
                pl.BlockSpec((tm, hdim), lambda m, k: (m, 0)),  # x0 rows for this M tile
                pl.BlockSpec((hdim, hdim), lambda m, k: (0, 0)),  # resident folded weight
            ],
            out_specs=pl.BlockSpec((tm, hdim), lambda m, k: (m, 0)),
            scratch_shapes=[pltpu.VMEM((tm, hdim), jnp.float32)],
        ),
        compiler_params=pltpu.CompilerParams(
            dimension_semantics=("parallel", "arbitrary"),
            vmem_limit_bytes=vmem_limit,
        ),
    )(adj_bf16, h, x0, wfold_bf16)


# ----------------------------------------------------------------------------- forward

def gcnii_forward(x, adj_hat, params, *, n_layers, alpha, theta):
    N, din = x.shape
    hidden = params["w1t"].shape[1]
    dout = params["w2t"].shape[1]

    # Lane/row padding: everything to multiples of 128 (lane-dense, fills the MXU rows).
    n_pad = _round_up(max(N, LANE), LANE)
    din_p = _round_up(din, LANE)
    hid_p = _round_up(hidden, LANE)
    dout_p = _round_up(dout, LANE)

    tm = 256 if n_pad % 256 == 0 else 128                       # row tile (MXU M)
    tk = next(t for t in (512, 256, 128) if n_pad % t == 0)     # adjacency reduction tile
    vmem_limit = _vmem_limit_bytes()

    bf = jnp.bfloat16
    x_p = _pad_to(x.astype(jnp.float32), (n_pad, din_p))
    # Pre-scale adjacency by (1 - alpha); store bf16 (it is the large operand).
    adj_p = _pad_to(((1.0 - alpha) * adj_hat).astype(jnp.float32), (n_pad, n_pad)).astype(bf)
    w1_p = _pad_to(params["w1t"], (din_p, hid_p)).astype(bf)
    b1_p = _pad_to(params["b1"], (1, hid_p)).astype(jnp.float32)
    w2_p = _pad_to(params["w2t"], (hid_p, dout_p)).astype(bf)
    b2_p = _pad_to(params["b2"], (1, dout_p)).astype(jnp.float32)

    # Fold the identity blend into the per-layer weight: W'_l = (1-beta_l) I + beta_l Wc_l.
    eye = jnp.eye(hidden, dtype=jnp.float32)
    wfolds = []
    for l in range(n_layers):
        beta = math.log(theta / (l + 1) + 1.0)
        wfolds.append(
            _pad_to((1.0 - beta) * eye + beta * params["wc"][l], (hid_p, hid_p)).astype(bf)
        )

    # lin1 + ReLU
    h = _linear(x_p, w1_p, b1_p, relu=True, tm=tm, vmem_limit=vmem_limit)
    x0 = h
    # GCN2Conv layers
    for l in range(n_layers):
        h = _gcn2_layer(adj_p, h, x0, wfolds[l],
                        alpha=float(alpha), tm=tm, tk=tk, vmem_limit=vmem_limit)
    # lin2
    out = _linear(h, w2_p, b2_p, relu=False, tm=tm, vmem_limit=vmem_limit)
    return out[:N, :dout]

    # TODO(synk): dropout is identity here (module default p=0 / eval mode); stochastic dropout
    # would use pltpu.prng_seed + pltpu.prng_random_bits inside the kernels.
    # TODO(synk): for large sparse graphs, replace the dense A_hat tiles with a block-sparse /
    # CSR formulation via PrefetchScalarGridSpec (scalar-prefetched block index lists) so that
    # all-zero adjacency tiles are skipped.


# ----------------------------------------------------------------------------- glue + references

def build_normalized_adjacency(edge_index, num_nodes):
    """Dense D^-1/2 (A + I) D^-1/2 with A[dst, src] += 1 per edge (duplicates summed, like PyG),
    self loops added only where missing (add_remaining_self_loops)."""
    src, dst = edge_index[0], edge_index[1]
    a = jnp.zeros((num_nodes, num_nodes), jnp.float32).at[dst, src].add(1.0)
    diag = jnp.diagonal(a)
    a = a + jnp.diag(jnp.where(diag > 0, 0.0, 1.0))
    deg = a.sum(axis=1)
    dinv = jnp.where(deg > 0, jax.lax.rsqrt(deg), 0.0)
    return dinv[:, None] * a * dinv[None, :]


def gcnii_reference_f32(x, adj_hat, params, *, n_layers, alpha, theta):
    """Faithful f32 reference for the module semantics."""
    h = jnp.maximum(x @ params["w1t"] + params["b1"], 0.0)
    x0 = h
    for l in range(n_layers):
        beta = math.log(theta / (l + 1) + 1.0)
        hc = (1.0 - alpha) * (adj_hat @ h) + alpha * x0
        h = jnp.maximum((1.0 - beta) * hc + beta * (hc @ params["wc"][l]), 0.0)
    return h @ params["w2t"] + params["b2"]


def gcnii_reference_bf16(x, adj_hat, params, *, n_layers, alpha, theta):
    """Reference mirroring the kernel arithmetic (bf16 matmul inputs, folded weights)."""
    bf = jnp.bfloat16

    def mm(a, b):
        return jnp.dot(a.astype(bf), b.astype(bf), preferred_element_type=jnp.float32)

    h = jnp.maximum(mm(x, params["w1t"]) + params["b1"], 0.0)
    x0 = h
    adj_s = (1.0 - alpha) * adj_hat
    hidden = params["w1t"].shape[1]
    eye = jnp.eye(hidden, dtype=jnp.float32)
    for l in range(n_layers):
        beta = math.log(theta / (l + 1) + 1.0)
        wfold = (1.0 - beta) * eye + beta * params["wc"][l]
        hc = mm(adj_s, h) + alpha * x0
        h = jnp.maximum(mm(hc, wfold), 0.0)
    return mm(h, params["w2t"]) + params["b2"]


if __name__ == "__main__":
    # Small, deterministic problem.
    N, DIN, HIDDEN, DOUT = 64, 16, 32, 8
    N_LAYERS = 2
    ALPHA = 0.1   # kw['alpha']
    THETA = 0.5   # kw['beta'] (theta in GCN2Conv)

    key = jax.random.PRNGKey(0)
    kx, ke, k1, kb1, kc, k2, kb2 = jax.random.split(key, 7)

    # Node features.
    x = jax.random.normal(kx, (N, DIN), jnp.float32)

    # Deterministic synthetic graph: ring + a few random (symmetrized) edges.
    ring_src = jnp.arange(N, dtype=jnp.int32)
    ring_dst = (ring_src + 1) % N
    rnd = jax.random.randint(ke, (2, 64), 0, N, dtype=jnp.int32)
    src = jnp.concatenate([ring_src, ring_dst, rnd[0], rnd[1]])
    dst = jnp.concatenate([ring_dst, ring_src, rnd[1], rnd[0]])
    edge_index = jnp.stack([src, dst])            # shape (2, E)

    adj_hat = build_normalized_adjacency(edge_index, N)

    # Deterministic parameter init (shapes from the module's __init__).
    params = {
        "w1t": 0.1 * jax.random.normal(k1, (DIN, HIDDEN), jnp.float32),   # lin1.weight^T
        "b1": 0.1 * jax.random.normal(kb1, (1, HIDDEN), jnp.float32),     # lin1.bias
        "wc": 0.1 * jax.random.normal(kc, (N_LAYERS, HIDDEN, HIDDEN), jnp.float32),  # GCN2Conv.weight1
        "w2t": 0.1 * jax.random.normal(k2, (HIDDEN, DOUT), jnp.float32),  # lin2.weight^T
        "b2": 0.1 * jax.random.normal(kb2, (1, DOUT), jnp.float32),       # lin2.bias
    }

    run = jax.jit(functools.partial(
        gcnii_forward, n_layers=N_LAYERS, alpha=ALPHA, theta=THETA))
    out = jax.block_until_ready(run(x, adj_hat, params))
    assert out.shape == (N, DOUT)

    # Exact-semantics check (same bf16-input / f32-accumulate arithmetic as the kernels).
    ref_bf16 = gcnii_reference_bf16(x, adj_hat, params, n_layers=N_LAYERS, alpha=ALPHA, theta=THETA)
    assert jnp.allclose(out, ref_bf16, atol=2e-3, rtol=2e-3), "mismatch vs bf16-matched reference"

    # Sanity check vs full-f32 module semantics (looser tolerance for bf16 matmul inputs).
    ref_f32 = gcnii_reference_f32(x, adj_hat, params, n_layers=N_LAYERS, alpha=ALPHA, theta=THETA)
    assert jnp.allclose(out, ref_f32, atol=5e-2, rtol=5e-2), "mismatch vs f32 reference"

    print("KERNEL_OK")
</pallas_src>

<mosaic_0001>
module attributes {stable_mosaic.version = 11 : i64} {
  func.func @_linear_kernel(%arg0: i32, %arg1: memref<128x128xf32, #tpu.memory_space<vmem>>, %arg2: memref<128x128xbf16, #tpu.memory_space<vmem>>, %arg3: memref<1x128xf32, #tpu.memory_space<vmem>>, %arg4: memref<128x128xf32, #tpu.memory_space<vmem>>) attributes {dimension_semantics = [#tpu.dimension_semantics<parallel>], iteration_bounds = array<i64: 1>, scalar_prefetch = 0 : i64, scratch_operands = 0 : i64, tpu.core_type = #tpu.core_type<tc>, window_params = [{transform_indices = @transform_0, window_bounds = array<i64: 128, 128>}, {pipeline_mode = #tpu.pipeline_mode<synchronous>, transform_indices = @transform_1, window_bounds = array<i64: 128, 128>}, {pipeline_mode = #tpu.pipeline_mode<synchronous>, transform_indices = @transform_2, window_bounds = array<i64: 1, 128>}, {transform_indices = @transform_3, window_bounds = array<i64: 128, 128>}]} {
    %c0 = arith.constant 0 : index
    %c0_0 = arith.constant 0 : index
    %0 = vector.load %arg1[%c0, %c0_0] : memref<128x128xf32, #tpu.memory_space<vmem>>, vector<128x128xf32>
    %1 = arith.truncf %0 : vector<128x128xf32> to vector<128x128xbf16>
    %c0_1 = arith.constant 0 : index
    %c0_2 = arith.constant 0 : index
    %2 = vector.load %arg2[%c0_1, %c0_2] : memref<128x128xbf16, #tpu.memory_space<vmem>>, vector<128x128xbf16>
    %cst = arith.constant dense<0.000000e+00> : vector<128x128xf32>
    %3 = tpu.matmul %1, %2, %cst {dimension_numbers = #tpu.dot_dimension_numbers<[1], [0], [0], [1], [0, 0, 1, 1], [], []>} : vector<128x128xbf16>, vector<128x128xbf16>, vector<128x128xf32> -> vector<128x128xf32>
    %c0_3 = arith.constant 0 : index
    %c0_4 = arith.constant 0 : index
    %4 = vector.load %arg3[%c0_3, %c0_4] : memref<1x128xf32, #tpu.memory_space<vmem>>, vector<1x128xf32>
    %5 = vector.broadcast %4 : vector<1x128xf32> to vector<128x128xf32>
    %6 = arith.addf %3, %5 : vector<128x128xf32>
    %cst_5 = arith.constant 0.000000e+00 : f32
    %7 = vector.broadcast %cst_5 : f32 to vector<128x128xf32>
    %8 = arith.maximumf %6, %7 : vector<128x128xf32>
    %c0_6 = arith.constant 0 : index
    %c0_7 = arith.constant 0 : index
    %9 = vector.load %arg4[%c0_6, %c0_7] : memref<128x128xf32, #tpu.memory_space<vmem>>, vector<128x128xf32>
    tpu.vector_store %arg4[%c0_6, %c0_7], %8 {strides = array<i32>} : memref<128x128xf32, #tpu.memory_space<vmem>>, vector<128x128xf32>,
    return
  }
  func.func @transform_0(%arg0: i32) -> (i32, i32) {
    %c0_i32 = arith.constant 0 : i32
    %c0_i32_0 = arith.constant 0 : i32
    return %arg0, %c0_i32 : i32, i32
  }
  func.func @transform_1(%arg0: i32) -> (i32, i32) {
    %c0_i32 = arith.constant 0 : i32
    %c0_i32_0 = arith.constant 0 : i32
    %c0_i32_1 = arith.constant 0 : i32
    return %c0_i32, %c0_i32_0 : i32, i32
  }
  func.func @transform_2(%arg0: i32) -> (i32, i32) {
    %c0_i32 = arith.constant 0 : i32
    %c0_i32_0 = arith.constant 0 : i32
    %c0_i32_1 = arith.constant 0 : i32
    return %c0_i32, %c0_i32_0 : i32, i32
  }
  func.func @transform_3(%arg0: i32) -> (i32, i32) {
    %c0_i32 = arith.constant 0 : i32
    %c0_i32_0 = arith.constant 0 : i32
    return %arg0, %c0_i32 : i32, i32
  }
}

module attributes {stable_mosaic.version = 11 : i64} {
  func.func @_gcn2_layer_kernel(%arg0: i32, %arg1: i32, %arg2: memref<128x128xbf16, #tpu.memory_space<vmem>>, %arg3: memref<128x128xf32, #tpu.memory_space<vmem>>, %arg4: memref<128x128xf32, #tpu.memory_space<vmem>>, %arg5: memref<128x128xbf16, #tpu.memory_space<vmem>>, %arg6: memref<128x128xf32, #tpu.memory_space<vmem>>, %arg7: memref<128x128xf32, #tpu.memory_space<vmem>>) attributes {dimension_semantics = [#tpu.dimension_semantics<parallel>, #tpu.dimension_semantics<arbitrary>], iteration_bounds = array<i64: 1, 1>, scalar_prefetch = 0 : i64, scratch_operands = 1 : i64, tpu.core_type = #tpu.core_type<tc>, window_params = [{transform_indices = @transform_0, window_bounds = array<i64: 128, 128>}, {transform_indices = @transform_1, window_bounds = array<i64: 128, 128>}, {transform_indices = @transform_2, window_bounds = array<i64: 128, 128>}, {pipeline_mode = #tpu.pipeline_mode<synchronous>, transform_indices = @transform_3, window_bounds = array<i64: 128, 128>}, {transform_indices = @transform_4, window_bounds = array<i64: 128, 128>}]} {
    %c0_i32 = arith.constant 0 : i32
    %0 = arith.cmpi eq, %arg1, %c0_i32 : i32
    %1 = arith.extui %0 : i1 to i32
    %c0_i32_0 = arith.constant 0 : i32
    %2 = arith.cmpi ne, %1, %c0_i32_0 : i32
    scf.if %2 {
      %c0_10 = arith.constant 0 : index
      %c0_11 = arith.constant 0 : index
      %13 = vector.load %arg4[%c0_10, %c0_11] : memref<128x128xf32, #tpu.memory_space<vmem>>, vector<128x128xf32>
      %cst_12 = arith.constant 1.000000e-01 : f32
      %14 = vector.broadcast %cst_12 : f32 to vector<128x128xf32>
      %15 = arith.mulf %14, %13 : vector<128x128xf32>
      %c0_13 = arith.constant 0 : index
      %c0_14 = arith.constant 0 : index
      %16 = vector.load %arg7[%c0_13, %c0_14] : memref<128x128xf32, #tpu.memory_space<vmem>>, vector<128x128xf32>
      tpu.vector_store %arg7[%c0_13, %c0_14], %15 {strides = array<i32>} : memref<128x128xf32, #tpu.memory_space<vmem>>, vector<128x128xf32>,
    } else {
    }
    %c0 = arith.constant 0 : index
    %c0_1 = arith.constant 0 : index
    %3 = vector.load %arg7[%c0, %c0_1] : memref<128x128xf32, #tpu.memory_space<vmem>>, vector<128x128xf32>
    %c0_2 = arith.constant 0 : index
    %c0_3 = arith.constant 0 : index
    %4 = vector.load %arg2[%c0_2, %c0_3] : memref<128x128xbf16, #tpu.memory_space<vmem>>, vector<128x128xbf16>
    %c0_4 = arith.constant 0 : index
    %c0_5 = arith.constant 0 : index
    %5 = vector.load %arg3[%c0_4, %c0_5] : memref<128x128xf32, #tpu.memory_space<vmem>>, vector<128x128xf32>
    %6 = arith.truncf %5 : vector<128x128xf32> to vector<128x128xbf16>
    %cst = arith.constant dense<0.000000e+00> : vector<128x128xf32>
    %7 = tpu.matmul %4, %6, %cst {dimension_numbers = #tpu.dot_dimension_numbers<[1], [0], [0], [1], [0, 0, 1, 1], [], []>} : vector<128x128xbf16>, vector<128x128xbf16>, vector<128x128xf32> -> vector<128x128xf32>
    %8 = arith.addf %3, %7 : vector<128x128xf32>
    %c0_6 = arith.constant 0 : index
    %c0_7 = arith.constant 0 : index
    %9 = vector.load %arg7[%c0_6, %c0_7] : memref<128x128xf32, #tpu.memory_space<vmem>>, vector<128x128xf32>
    tpu.vector_store %arg7[%c0_6, %c0_7], %8 {strides = array<i32>} : memref<128x128xf32, #tpu.memory_space<vmem>>, vector<128x128xf32>,
    %c0_i32_8 = arith.constant 0 : i32
    %10 = arith.cmpi eq, %arg1, %c0_i32_8 : i32
    %11 = arith.extui %10 : i1 to i32
    %c0_i32_9 = arith.constant 0 : i32
    %12 = arith.cmpi ne, %11, %c0_i32_9 : i32
    scf.if %12 {
      %c0_10 = arith.constant 0 : index
      %c0_11 = arith.constant 0 : index
      %13 = vector.load %arg7[%c0_10, %c0_11] : memref<128x128xf32, #tpu.memory_space<vmem>>, vector<128x128xf32>
      %14 = arith.truncf %13 : vector<128x128xf32> to vector<128x128xbf16>
      %c0_12 = arith.constant 0 : index
      %c0_13 = arith.constant 0 : index
      %15 = vector.load %arg5[%c0_12, %c0_13] : memref<128x128xbf16, #tpu.memory_space<vmem>>, vector<128x128xbf16>
      %cst_14 = arith.constant dense<0.000000e+00> : vector<128x128xf32>
      %16 = tpu.matmul %14, %15, %cst_14 {dimension_numbers = #tpu.dot_dimension_numbers<[1], [0], [0], [1], [0, 0, 1, 1], [], []>} : vector<128x128xbf16>, vector<128x128xbf16>, vector<128x128xf32> -> vector<128x128xf32>
      %cst_15 = arith.constant 0.000000e+00 : f32
      %17 = vector.broadcast %cst_15 : f32 to vector<128x128xf32>
      %18 = arith.maximumf %16, %17 : vector<128x128xf32>
      %c0_16 = arith.constant 0 : index
      %c0_17 = arith.constant 0 : index
      %19 = vector.load %arg6[%c0_16, %c0_17] : memref<128x128xf32, #tpu.memory_space<vmem>>, vector<128x128xf32>
      tpu.vector_store %arg6[%c0_16, %c0_17], %18 {strides = array<i32>} : memref<128x128xf32, #tpu.memory_space<vmem>>, vector<128x128xf32>,
    } else {
    }
    return
  }
  func.func @transform_0(%arg0: i32, %arg1: i32) -> (i32, i32) {
    %c0_i32 = arith.constant 0 : i32
    return %arg0, %arg1 : i32, i32
  }
  func.func @transform_1(%arg0: i32, %arg1: i32) -> (i32, i32) {
    %c0_i32 = arith.constant 0 : i32
    %c0_i32_0 = arith.constant 0 : i32
    return %arg1, %c0_i32 : i32, i32
  }
  func.func @transform_2(%arg0: i32, %arg1: i32) -> (i32, i32) {
    %c0_i32 = arith.constant 0 : i32
    %c0_i32_0 = arith.constant 0 : i32
    return %arg0, %c0_i32 : i32, i32
  }
  func.func @transform_3(%arg0: i32, %arg1: i32) -> (i32, i32) {
    %c0_i32 = arith.constant 0 : i32
    %c0_i32_0 = arith.constant 0 : i32
    %c0_i32_1 = arith.constant 0 : i32
    return %c0_i32, %c0_i32_0 : i32, i32
  }
  func.func @transform_4(%arg0: i32, %arg1: i32) -> (i32, i32) {
    %c0_i32 = arith.constant 0 : i32
    %c0_i32_0 = arith.constant 0 : i32
    return %arg0, %c0_i32 : i32, i32
  }
}

module attributes {stable_mosaic.version = 11 : i64} {
  func.func @_linear_kernel(%arg0: i32, %arg1: memref<128x128xf32, #tpu.memory_space<vmem>>, %arg2: memref<128x128xbf16, #tpu.memory_space<vmem>>, %arg3: memref<1x128xf32, #tpu.memory_space<vmem>>, %arg4: memref<128x128xf32, #tpu.memory_space<vmem>>) attributes {dimension_semantics = [#tpu.dimension_semantics<parallel>], iteration_bounds = array<i64: 1>, scalar_prefetch = 0 : i64, scratch_operands = 0 : i64, tpu.core_type = #tpu.core_type<tc>, window_params = [{transform_indices = @transform_0, window_bounds = array<i64: 128, 128>}, {pipeline_mode = #tpu.pipeline_mode<synchronous>, transform_indices = @transform_1, window_bounds = array<i64: 128, 128>}, {pipeline_mode = #tpu.pipeline_mode<synchronous>, transform_indices = @transform_2, window_bounds = array<i64: 1, 128>}, {transform_indices = @transform_3, window_bounds = array<i64: 128, 128>}]} {
    %c0 = arith.constant 0 : index
    %c0_0 = arith.constant 0 : index
    %0 = vector.load %arg1[%c0, %c0_0] : memref<128x128xf32, #tpu.memory_space<vmem>>, vector<128x128xf32>
    %1 = arith.truncf %0 : vector<128x128xf32> to vector<128x128xbf16>
    %c0_1 = arith.constant 0 : index
    %c0_2 = arith.constant 0 : index
    %2 = vector.load %arg2[%c0_1, %c0_2] : memref<128x128xbf16, #tpu.memory_space<vmem>>, vector<128x128xbf16>
    %cst = arith.constant dense<0.000000e+00> : vector<128x128xf32>
    %3 = tpu.matmul %1, %2, %cst {dimension_numbers = #tpu.dot_dimension_numbers<[1], [0], [0], [1], [0, 0, 1, 1], [], []>} : vector<128x128xbf16>, vector<128x128xbf16>, vector<128x128xf32> -> vector<128x128xf32>
    %c0_3 = arith.constant 0 : index
    %c0_4 = arith.constant 0 : index
    %4 = vector.load %arg3[%c0_3, %c0_4] : memref<1x128xf32, #tpu.memory_space<vmem>>, vector<1x128xf32>
    %5 = vector.broadcast %4 : vector<1x128xf32> to vector<128x128xf32>
    %6 = arith.addf %3, %5 : vector<128x128xf32>
    %c0_5 = arith.constant 0 : index
    %c0_6 = arith.constant 0 : index
    %7 = vector.load %arg4[%c0_5, %c0_6] : memref<128x128xf32, #tpu.memory_space<vmem>>, vector<128x128xf32>
    tpu.vector_store %arg4[%c0_5, %c0_6], %6 {strides = array<i32>} : memref<128x128xf32, #tpu.memory_space<vmem>>, vector<128x128xf32>,
    return
  }
  func.func @transform_0(%arg0: i32) -> (i32, i32) {
    %c0_i32 = arith.constant 0 : i32
    %c0_i32_0 = arith.constant 0 : i32
    return %arg0, %c0_i32 : i32, i32
  }
  func.func @transform_1(%arg0: i32) -> (i32, i32) {
    %c0_i32 = arith.constant 0 : i32
    %c0_i32_0 = arith.constant 0 : i32
    %c0_i32_1 = arith.constant 0 : i32
    return %c0_i32, %c0_i32_0 : i32, i32
  }
  func.func @transform_2(%arg0: i32) -> (i32, i32) {
    %c0_i32 = arith.constant 0 : i32
    %c0_i32_0 = arith.constant 0 : i32
    %c0_i32_1 = arith.constant 0 : i32
    return %c0_i32, %c0_i32_0 : i32, i32
  }
  func.func @transform_3(%arg0: i32) -> (i32, i32) {
    %c0_i32 = arith.constant 0 : i32
    %c0_i32_0 = arith.constant 0 : i32
    return %arg0, %c0_i32 : i32, i32
  }
}

</mosaic_0001>

<bundles_post_ra>
// kernel: gcnii_forward.4
= control target key start
LH: loop header
LB: loop body
LE: loop exit
PB: predicated region body
PF: predicated region fallthrough
CT: control target
= control target key end

     0   :  { %s467_s1 = inlined_call_operand.vmem [shape: bf16[128,128], index: 1, kind: input, shape index: {}]   ;;  %s468_s0 = inlined_call_operand.vmem [shape: f32[128,128], index: 0, kind: input, shape index: {}]   ;;  %s469_s2 = inlined_call_operand.vmem [shape: f32[1,128], index: 2, kind: input, shape index: {}]   ;;  %s470_s3 = inlined_call_operand.vmem [shape: f32[128,128], index: 3, kind: output, shape index: {}]  }
   0x1   :  { %v316_v0 = vld [vmem:[%s467_s1] sm:$0xff]   ;;  %v317_v1 = vld [vmem:[%s467_s1 + $0x8] sm:$0xff]   ;;  %v318_v2 = vld [vmem:[%s467_s1 + $0x10] sm:$0xff]  }
   0x2   :  { %268 = vmatprep.subr.bf16.mxu0 %v316_v0  ;;  %300 = vmatprep.subr.bf16.mxu1 %v316_v0  ;;  %v319_v3 = vld [vmem:[%s467_s1 + $0x18] sm:$0xff]   ;;  %v15_v4 = vld [vmem:[%s468_s0] sm:$0xff]  ;;  %v16_v5 = vld [vmem:[%s468_s0 + $0x8] sm:$0xff] }
   0x3   :  { %269 = vmatpush3.bf16.msra.mxu0 %v316_v0  ;;  %308 = vmatpush3.bf16.msra.mxu1 %v316_v0  ;;  %v23_v6 = vld [vmem:[%s468_s0 + $0x40] sm:$0xff]  ;;  %v31_v7 = vpack.c.bf16 %v16_v5, %v15_v4  ;;  %v24_v8 = vld [vmem:[%s468_s0 + $0x48] sm:$0xff]  ;;  %v322_v12 = vld [vmem:[%s467_s1 + $0x30] sm:$0xff]  }
   0x4   :  { %270 = vmatprep.subr.bf16.mxu0 %v317_v1  ;;  %301 = vmatprep.subr.bf16.mxu1 %v317_v1  ;;  %v35_v9 = vpack.c.bf16 %v24_v8, %v23_v6  ;;  %v320_v10 = vld [vmem:[%s467_s1 + $0x20] sm:$0xff]   ;;  %v321_v11 = vld [vmem:[%s467_s1 + $0x28] sm:$0xff]   ;;  %v323_v13 = vld [vmem:[%s467_s1 + $0x38] sm:$0xff]  }
   0x5   :  { %284 = vmatprep.mubr.bf16.mxu0 %v31_v7  ;;  %v17_v14 = vld [vmem:[%s468_s0 + $0x10] sm:$0xff]  ;;  %v18_v15 = vld [vmem:[%s468_s0 + $0x18] sm:$0xff]  ;;  %v19_v18 = vld [vmem:[%s468_s0 + $0x20] sm:$0xff] }
   0x6   :  { %292 = vmatprep.mubr.bf16.mxu1 %v35_v9  ;;  %v25_v16 = vld [vmem:[%s468_s0 + $0x50] sm:$0xff]  ;;  %v26_v17 = vld [vmem:[%s468_s0 + $0x58] sm:$0xff]  ;;  %v20_v19 = vld [vmem:[%s468_s0 + $0x28] sm:$0xff]  ;;  %v32_v22 = vpack.c.bf16 %v18_v15, %v17_v14 }
   0x7   :  { %271 = vmatpush3.bf16.msra.mxu0 %v317_v1  ;;  %309 = vmatpush3.bf16.msra.mxu1 %v317_v1  ;;  %v27_v20 = vld [vmem:[%s468_s0 + $0x60] sm:$0xff]  ;;  %v28_v21 = vld [vmem:[%s468_s0 + $0x68] sm:$0xff]  ;;  %v36_v23 = vpack.c.bf16 %v26_v17, %v25_v16  ;;  %v33_v24 = vpack.c.bf16 %v20_v19, %v19_v18  ;;  %v21_v26 = vld [vmem:[%s468_s0 + $0x30] sm:$0xff] }
   0x8   :  { %272 = vmatprep.subr.bf16.mxu0 %v318_v2  ;;  %302 = vmatprep.subr.bf16.mxu1 %v318_v2  ;;  %v37_v25 = vpack.c.bf16 %v28_v21, %v27_v20  ;;  %v22_v27 = vld [vmem:[%s468_s0 + $0x38] sm:$0xff]  ;;  %v29_v28 = vld [vmem:[%s468_s0 + $0x70] sm:$0xff]  ;;  %v243_v32 = vld [vmem:[%s469_s2] ss:$0 sm:$0xff] }
   0x9   :  { %v30_v29 = vld [vmem:[%s468_s0 + $0x78] sm:$0xff]  ;;  %v34_v30 = vpack.c.bf16 %v22_v27, %v21_v26 }
   0xa   :  { %v38_v31 = vpack.c.bf16 %v30_v29, %v29_v28 }
   0xb   :  { %273 = vmatpush3.bf16.msra.mxu0 %v318_v2  ;;  %310 = vmatpush3.bf16.msra.mxu1 %v318_v2 }
   0xc   :  { %274 = vmatprep.subr.bf16.mxu0 %v319_v3  ;;  %303 = vmatprep.subr.bf16.mxu1 %v319_v3 }
   0xf   :  { %275 = vmatpush3.bf16.msra.mxu0 %v319_v3  ;;  %311 = vmatpush3.bf16.msra.mxu1 %v319_v3 }
  0x10   :  { %276 = vmatprep.subr.bf16.mxu0 %v320_v10  ;;  %304 = vmatprep.subr.bf16.mxu1 %v320_v10 }
  0x13   :  { %277 = vmatpush3.bf16.msra.mxu0 %v320_v10  ;;  %312 = vmatpush3.bf16.msra.mxu1 %v320_v10 }
  0x14   :  { %278 = vmatprep.subr.bf16.mxu0 %v321_v11  ;;  %305 = vmatprep.subr.bf16.mxu1 %v321_v11 }
  0x17   :  { %279 = vmatpush3.bf16.msra.mxu0 %v321_v11  ;;  %313 = vmatpush3.bf16.msra.mxu1 %v321_v11 }
  0x18   :  { %280 = vmatprep.subr.bf16.mxu0 %v322_v12  ;;  %306 = vmatprep.subr.bf16.mxu1 %v322_v12 }
  0x1b   :  { %281 = vmatpush3.bf16.msra.mxu0 %v322_v12  ;;  %314 = vmatpush3.bf16.msra.mxu1 %v322_v12 }
  0x1c   :  { %282 = vmatprep.subr.bf16.mxu0 %v323_v13  ;;  %307 = vmatprep.subr.bf16.mxu1 %v323_v13 }
  0x1f   :  { %283 = vmatpush3.bf16.msra.mxu0 %v323_v13  ;;  %315 = vmatpush3.bf16.msra.mxu1 %v323_v13 }
  0x22   :  { %285 = vmatmul.mubr.bf16.vlgmr.msra.gmra.mrb[0].mxu0 %v32_v22  ;;  %293 = vmatmul.mubr.bf16.vlgmr.msra.gmra.mrb[0].mxu1 %v36_v23 }
  0x23   :  { %288 = vmatprep.mubr.bf16.mxu0 %v33_v24  ;;  %296 = vmatprep.mubr.bf16.mxu1 %v37_v25 }
  0x2a   :  { %289 = vmatmul.mubr.bf16.gmra.mrb[4].mxu0 %v34_v30  ;;  %297 = vmatmul.mubr.bf16.gmra.mrb[4].mxu1 %v38_v31 }
  0xf5   :  { %v286_v33 = vpop.f32.mrb[0].mxu0  ;;  %v294_v34 = vpop.f32.mrb[0].mxu1 }
  0xf6   :  { %v153_v35 = vadd.f32 %v286_v33, %v243_v32  ;;  %v185_v36 = vadd.f32 %v294_v34, %v243_v32  ;;  %v144_v37 = vpop.f32.mrb[1].mxu0  ;;  %v176_v38 = vpop.f32.mrb[1].mxu1 }
  0xf7   :  { %v145_v39 = vadd.f32 %v243_v32, %v144_v37  ;;  %v177_v40 = vadd.f32 %v243_v32, %v176_v38  ;;  %v287_v41 = vpop.f32.mrb[2].mxu0  ;;  %v295_v42 = vpop.f32.mrb[2].mxu1 }
  0xf8   :  { %v209_v43 = vmax.f32 %v153_v35, 0.0  ;;  %v217_v44 = vmax.f32 %v185_v36, 0.0  ;;  %v156_v45 = vadd.f32 %v287_v41, %v243_v32  ;;  %v188_v46 = vadd.f32 %v295_v42, %v243_v32  ;;  %v147_v47 = vpop.f32.mrb[3].mxu0  ;;  %v179_v48 = vpop.f32.mrb[3].mxu1 }
  0xf9   :  { %v207_v49 = vmax.f32 %v145_v39, 0.0  ;;  %v215_v50 = vmax.f32 %v177_v40, 0.0  ;;  %v148_v51 = vadd.f32 %v243_v32, %v147_v47  ;;  %v180_v52 = vadd.f32 %v243_v32, %v179_v48 }
  0xfa   :  { %225 = vst [vmem:[%s470_s3 + $0x10] sm:$0xff] %v209_v43  ;;  %233 = vst [vmem:[%s470_s3 + $0x50] sm:$0xff] %v217_v44  ;;  %v210_v53 = vmax.f32 %v156_v45, 0.0  ;;  %v218_v54 = vmax.f32 %v188_v46, 0.0 }
  0xfb   :  { %223 = vst [vmem:[%s470_s3] sm:$0xff] %v207_v49  ;;  %231 = vst [vmem:[%s470_s3 + $0x40] sm:$0xff] %v215_v50  ;;  %v208_v55 = vmax.f32 %v148_v51, 0.0  ;;  %v216_v56 = vmax.f32 %v180_v52, 0.0 }
  0xfc   :  { %226 = vst [vmem:[%s470_s3 + $0x18] sm:$0xff] %v210_v53  ;;  %234 = vst [vmem:[%s470_s3 + $0x58] sm:$0xff] %v218_v54 }
  0xfd   :  { %224 = vst [vmem:[%s470_s3 + $0x8] sm:$0xff] %v208_v55  ;;  %232 = vst [vmem:[%s470_s3 + $0x48] sm:$0xff] %v216_v56  ;;  %v290_v57 = vpop.f32.mrb[4].mxu0  ;;  %v298_v58 = vpop.f32.mrb[4].mxu1 }
  0xfe   :  { %v169_v59 = vadd.f32 %v290_v57, %v243_v32  ;;  %v201_v60 = vadd.f32 %v298_v58, %v243_v32  ;;  %v160_v61 = vpop.f32.mrb[5].mxu0  ;;  %v192_v62 = vpop.f32.mrb[5].mxu1 }
  0xff   :  { %v161_v63 = vadd.f32 %v243_v32, %v160_v61  ;;  %v193_v0 = vadd.f32 %v243_v32, %v192_v62  ;;  %v291_v1 = vpop.f32.mrb[6].mxu0  ;;  %v299_v2 = vpop.f32.mrb[6].mxu1 }
 0x100   :  { %v213_v3 = vmax.f32 %v169_v59, 0.0  ;;  %v221_v4 = vmax.f32 %v201_v60, 0.0  ;;  %v172_v5 = vadd.f32 %v291_v1, %v243_v32  ;;  %v204_v6 = vadd.f32 %v299_v2, %v243_v32  ;;  %v163_v7 = vpop.f32.mrb[7].mxu0  ;;  %v195_v8 = vpop.f32.mrb[7].mxu1 }
 0x101   :  { %v211_v9 = vmax.f32 %v161_v63, 0.0  ;;  %v219_v10 = vmax.f32 %v193_v0, 0.0  ;;  %v164_v11 = vadd.f32 %v243_v32, %v163_v7  ;;  %v196_v12 = vadd.f32 %v243_v32, %v195_v8 }
 0x102   :  { %229 = vst [vmem:[%s470_s3 + $0x30] sm:$0xff] %v213_v3  ;;  %237 = vst [vmem:[%s470_s3 + $0x70] sm:$0xff] %v221_v4  ;;  %v214_v13 = vmax.f32 %v172_v5, 0.0  ;;  %v222_v14 = vmax.f32 %v204_v6, 0.0 }
 0x103   :  { %227 = vst [vmem:[%s470_s3 + $0x20] sm:$0xff] %v211_v9  ;;  %235 = vst [vmem:[%s470_s3 + $0x60] sm:$0xff] %v219_v10  ;;  %v212_v15 = vmax.f32 %v164_v11, 0.0  ;;  %v220_v16 = vmax.f32 %v196_v12, 0.0 }
 0x104   :  { %230 = vst [vmem:[%s470_s3 + $0x38] sm:$0xff] %v214_v13  ;;  %238 = vst [vmem:[%s470_s3 + $0x78] sm:$0xff] %v222_v14 }
 0x105   :  { %228 = vst [vmem:[%s470_s3 + $0x28] sm:$0xff] %v212_v15  ;;  %236 = vst [vmem:[%s470_s3 + $0x68] sm:$0xff] %v220_v16 }

// kernel: gcnii_forward.7
= control target key start
LH: loop header
LB: loop body
LE: loop exit
PB: predicated region body
PF: predicated region fallthrough
CT: control target
= control target key end

     0   :  { %s451_s1 = inlined_call_operand.vmem [shape: bf16[128,128], index: 1, kind: input, shape index: {}]   ;;  %s452_s0 = inlined_call_operand.vmem [shape: f32[128,128], index: 0, kind: input, shape index: {}]   ;;  %s453_s2 = inlined_call_operand.vmem [shape: f32[1,128], index: 2, kind: input, shape index: {}]   ;;  %s454_s3 = inlined_call_operand.vmem [shape: f32[128,128], index: 3, kind: output, shape index: {}]  }
   0x1   :  { %v300_v0 = vld [vmem:[%s451_s1] sm:$0xff]   ;;  %v301_v1 = vld [vmem:[%s451_s1 + $0x8] sm:$0xff]   ;;  %v302_v2 = vld [vmem:[%s451_s1 + $0x10] sm:$0xff]  }
   0x2   :  { %252 = vmatprep.subr.bf16.mxu0 %v300_v0  ;;  %284 = vmatprep.subr.bf16.mxu1 %v300_v0  ;;  %v303_v3 = vld [vmem:[%s451_s1 + $0x18] sm:$0xff]   ;;  %v15_v4 = vld [vmem:[%s452_s0] sm:$0xff]  ;;  %v16_v5 = vld [vmem:[%s452_s0 + $0x8] sm:$0xff] }
   0x3   :  { %253 = vmatpush3.bf16.msra.mxu0 %v300_v0  ;;  %292 = vmatpush3.bf16.msra.mxu1 %v300_v0  ;;  %v23_v6 = vld [vmem:[%s452_s0 + $0x40] sm:$0xff]  ;;  %v31_v7 = vpack.c.bf16 %v16_v5, %v15_v4  ;;  %v24_v8 = vld [vmem:[%s452_s0 + $0x48] sm:$0xff]  ;;  %v306_v12 = vld [vmem:[%s451_s1 + $0x30] sm:$0xff]  }
   0x4   :  { %254 = vmatprep.subr.bf16.mxu0 %v301_v1  ;;  %285 = vmatprep.subr.bf16.mxu1 %v301_v1  ;;  %v35_v9 = vpack.c.bf16 %v24_v8, %v23_v6  ;;  %v304_v10 = vld [vmem:[%s451_s1 + $0x20] sm:$0xff]   ;;  %v305_v11 = vld [vmem:[%s451_s1 + $0x28] sm:$0xff]   ;;  %v307_v13 = vld [vmem:[%s451_s1 + $0x38] sm:$0xff]  }
   0x5   :  { %268 = vmatprep.mubr.bf16.mxu0 %v31_v7  ;;  %v17_v14 = vld [vmem:[%s452_s0 + $0x10] sm:$0xff]  ;;  %v18_v15 = vld [vmem:[%s452_s0 + $0x18] sm:$0xff]  ;;  %v19_v18 = vld [vmem:[%s452_s0 + $0x20] sm:$0xff] }
   0x6   :  { %276 = vmatprep.mubr.bf16.mxu1 %v35_v9  ;;  %v25_v16 = vld [vmem:[%s452_s0 + $0x50] sm:$0xff]  ;;  %v26_v17 = vld [vmem:[%s452_s0 + $0x58] sm:$0xff]  ;;  %v20_v19 = vld [vmem:[%s452_s0 + $0x28] sm:$0xff]  ;;  %v32_v22 = vpack.c.bf16 %v18_v15, %v17_v14 }
   0x7   :  { %255 = vmatpush3.bf16.msra.mxu0 %v301_v1  ;;  %293 = vmatpush3.bf16.msra.mxu1 %v301_v1  ;;  %v27_v20 = vld [vmem:[%s452_s0 + $0x60] sm:$0xff]  ;;  %v28_v21 = vld [vmem:[%s452_s0 + $0x68] sm:$0xff]  ;;  %v36_v23 = vpack.c.bf16 %v26_v17, %v25_v16  ;;  %v33_v24 = vpack.c.bf16 %v20_v19, %v19_v18  ;;  %v21_v26 = vld [vmem:[%s452_s0 + $0x30] sm:$0xff] }
   0x8   :  { %256 = vmatprep.subr.bf16.mxu0 %v302_v2  ;;  %286 = vmatprep.subr.bf16.mxu1 %v302_v2  ;;  %v37_v25 = vpack.c.bf16 %v28_v21, %v27_v20  ;;  %v22_v27 = vld [vmem:[%s452_s0 + $0x38] sm:$0xff]  ;;  %v29_v28 = vld [vmem:[%s452_s0 + $0x70] sm:$0xff]  ;;  %v227_v32 = vld [vmem:[%s453_s2] ss:$0 sm:$0xff] }
   0x9   :  { %v30_v29 = vld [vmem:[%s452_s0 + $0x78] sm:$0xff]  ;;  %v34_v30 = vpack.c.bf16 %v22_v27, %v21_v26 }
   0xa   :  { %v38_v31 = vpack.c.bf16 %v30_v29, %v29_v28 }
   0xb   :  { %257 = vmatpush3.bf16.msra.mxu0 %v302_v2  ;;  %294 = vmatpush3.bf16.msra.mxu1 %v302_v2 }
   0xc   :  { %258 = vmatprep.subr.bf16.mxu0 %v303_v3  ;;  %287 = vmatprep.subr.bf16.mxu1 %v303_v3 }
   0xf   :  { %259 = vmatpush3.bf16.msra.mxu0 %v303_v3  ;;  %295 = vmatpush3.bf16.msra.mxu1 %v303_v3 }
  0x10   :  { %260 = vmatprep.subr.bf16.mxu0 %v304_v10  ;;  %288 = vmatprep.subr.bf16.mxu1 %v304_v10 }
  0x13   :  { %261 = vmatpush3.bf16.msra.mxu0 %v304_v10  ;;  %296 = vmatpush3.bf16.msra.mxu1 %v304_v10 }
  0x14   :  { %262 = vmatprep.subr.bf16.mxu0 %v305_v11  ;;  %289 = vmatprep.subr.bf16.mxu1 %v305_v11 }
  0x17   :  { %263 = vmatpush3.bf16.msra.mxu0 %v305_v11  ;;  %297 = vmatpush3.bf16.msra.mxu1 %v305_v11 }
  0x18   :  { %264 = vmatprep.subr.bf16.mxu0 %v306_v12  ;;  %290 = vmatprep.subr.bf16.mxu1 %v306_v12 }
  0x1b   :  { %265 = vmatpush3.bf16.msra.mxu0 %v306_v12  ;;  %298 = vmatpush3.bf16.msra.mxu1 %v306_v12 }
  0x1c   :  { %266 = vmatprep.subr.bf16.mxu0 %v307_v13  ;;  %291 = vmatprep.subr.bf16.mxu1 %v307_v13 }
  0x1f   :  { %267 = vmatpush3.bf16.msra.mxu0 %v307_v13  ;;  %299 = vmatpush3.bf16.msra.mxu1 %v307_v13 }
  0x22   :  { %269 = vmatmul.mubr.bf16.vlgmr.msra.gmra.mrb[0].mxu0 %v32_v22  ;;  %277 = vmatmul.mubr.bf16.vlgmr.msra.gmra.mrb[0].mxu1 %v36_v23 }
  0x23   :  { %272 = vmatprep.mubr.bf16.mxu0 %v33_v24  ;;  %280 = vmatprep.mubr.bf16.mxu1 %v37_v25 }
  0x2a   :  { %273 = vmatmul.mubr.bf16.gmra.mrb[4].mxu0 %v34_v30  ;;  %281 = vmatmul.mubr.bf16.gmra.mrb[4].mxu1 %v38_v31 }
  0xf5   :  { %v270_v33 = vpop.f32.mrb[0].mxu0  ;;  %v278_v34 = vpop.f32.mrb[0].mxu1 }
  0xf6   :  { %v153_v35 = vadd.f32 %v270_v33, %v227_v32  ;;  %v185_v36 = vadd.f32 %v278_v34, %v227_v32  ;;  %v144_v37 = vpop.f32.mrb[1].mxu0  ;;  %v176_v38 = vpop.f32.mrb[1].mxu1 }
  0xf7   :  { %v145_v39 = vadd.f32 %v227_v32, %v144_v37  ;;  %v177_v40 = vadd.f32 %v227_v32, %v176_v38  ;;  %v271_v41 = vpop.f32.mrb[2].mxu0  ;;  %v279_v42 = vpop.f32.mrb[2].mxu1 }
  0xf8   :  { %209 = vst [vmem:[%s454_s3 + $0x10] sm:$0xff] %v153_v35  ;;  %217 = vst [vmem:[%s454_s3 + $0x50] sm:$0xff] %v185_v36  ;;  %v156_v43 = vadd.f32 %v271_v41, %v227_v32  ;;  %v188_v44 = vadd.f32 %v279_v42, %v227_v32  ;;  %v147_v45 = vpop.f32.mrb[3].mxu0  ;;  %v179_v46 = vpop.f32.mrb[3].mxu1 }
  0xf9   :  { %207 = vst [vmem:[%s454_s3] sm:$0xff] %v145_v39  ;;  %215 = vst [vmem:[%s454_s3 + $0x40] sm:$0xff] %v177_v40  ;;  %v148_v47 = vadd.f32 %v227_v32, %v147_v45  ;;  %v180_v48 = vadd.f32 %v227_v32, %v179_v46 }
  0xfa   :  { %210 = vst [vmem:[%s454_s3 + $0x18] sm:$0xff] %v156_v43  ;;  %218 = vst [vmem:[%s454_s3 + $0x58] sm:$0xff] %v188_v44 }
  0xfb   :  { %208 = vst [vmem:[%s454_s3 + $0x8] sm:$0xff] %v148_v47  ;;  %216 = vst [vmem:[%s454_s3 + $0x48] sm:$0xff] %v180_v48 }
  0xfd   :  { %v274_v49 = vpop.f32.mrb[4].mxu0  ;;  %v282_v50 = vpop.f32.mrb[4].mxu1 }
  0xfe   :  { %v169_v51 = vadd.f32 %v274_v49, %v227_v32  ;;  %v201_v52 = vadd.f32 %v282_v50, %v227_v32  ;;  %v160_v53 = vpop.f32.mrb[5].mxu0  ;;  %v192_v54 = vpop.f32.mrb[5].mxu1 }
  0xff   :  { %v161_v55 = vadd.f32 %v227_v32, %v160_v53  ;;  %v193_v56 = vadd.f32 %v227_v32, %v192_v54  ;;  %v275_v57 = vpop.f32.mrb[6].mxu0  ;;  %v283_v58 = vpop.f32.mrb[6].mxu1 }
 0x100   :  { %213 = vst [vmem:[%s454_s3 + $0x30] sm:$0xff] %v169_v51  ;;  %221 = vst [vmem:[%s454_s3 + $0x70] sm:$0xff] %v201_v52  ;;  %v172_v59 = vadd.f32 %v275_v57, %v227_v32  ;;  %v204_v60 = vadd.f32 %v283_v58, %v227_v32  ;;  %v163_v61 = vpop.f32.mrb[7].mxu0  ;;  %v195_v62 = vpop.f32.mrb[7].mxu1 }
 0x101   :  { %211 = vst [vmem:[%s454_s3 + $0x20] sm:$0xff] %v161_v55  ;;  %219 = vst [vmem:[%s454_s3 + $0x60] sm:$0xff] %v193_v56  ;;  %v164_v63 = vadd.f32 %v227_v32, %v163_v61  ;;  %v196_v0 = vadd.f32 %v227_v32, %v195_v62 }
 0x102   :  { %214 = vst [vmem:[%s454_s3 + $0x38] sm:$0xff] %v172_v59  ;;  %222 = vst [vmem:[%s454_s3 + $0x78] sm:$0xff] %v204_v60 }
 0x103   :  { %212 = vst [vmem:[%s454_s3 + $0x28] sm:$0xff] %v164_v63  ;;  %220 = vst [vmem:[%s454_s3 + $0x68] sm:$0xff] %v196_v0 }

// kernel: gcnii_forward.5
= control target key start
LH: loop header
LB: loop body
LE: loop exit
PB: predicated region body
PF: predicated region fallthrough
CT: control target
= control target key end

     0   :  { %s872_s1 = inlined_call_operand.vmem [shape: f32[128,128], index: 1, kind: input, shape index: {}, may-alias: {1,2}]   ;;  %s873_s0 = inlined_call_operand.vmem [shape: bf16[128,128], index: 0, kind: input, shape index: {}]   ;;  %s874_s3 = inlined_call_operand.vmem [shape: bf16[128,128], index: 3, kind: input, shape index: {}]   ;;  %s875_s2 = inlined_call_operand.vmem [shape: f32[128,128], index: 2, kind: input, shape index: {}, may-alias: {1,2}]   ;;  %s876_s4 = inlined_call_operand.vmem [shape: f32[128,128], index: 4, kind: output, shape index: {}]  }
   0x1   :  { %v102_v0 = vld [vmem:[%s872_s1] sm:$0xff]  ;;  %v103_v1 = vld [vmem:[%s872_s1 + $0x8] sm:$0xff]  ;;  %v104_v2 = vld [vmem:[%s872_s1 + $0x10] sm:$0xff] }
   0x2   :  { %v118_v3 = vpack.c.bf16 %v103_v1, %v102_v0  ;;  %v105_v4 = vld [vmem:[%s872_s1 + $0x18] sm:$0xff]  ;;  %v106_v6 = vld [vmem:[%s872_s1 + $0x20] sm:$0xff]  ;;  %v107_v7 = vld [vmem:[%s872_s1 + $0x28] sm:$0xff] }
   0x3   :  { %v119_v5 = vpack.c.bf16 %v105_v4, %v104_v2  ;;  %v108_v8 = vld [vmem:[%s872_s1 + $0x30] sm:$0xff]  ;;  %v120_v9 = vpack.c.bf16 %v107_v7, %v106_v6  ;;  %v109_v10 = vld [vmem:[%s872_s1 + $0x38] sm:$0xff]  ;;  %v639_v11 = vld [vmem:[%s873_s0] sm:$0xff]  }
   0x4   :  { %575 = vmatprep.subr.bf16.mxu0 %v118_v3  ;;  %591 = vmatprep.mubr.bf16.mxu0 %v639_v11  ;;  %v121_v12 = vpack.c.bf16 %v109_v10, %v108_v8  ;;  %v110_v13 = vld [vmem:[%s872_s1 + $0x40] sm:$0xff]  ;;  %v111_v14 = vld [vmem:[%s872_s1 + $0x48] sm:$0xff]  ;;  %v112_v15 = vld [vmem:[%s872_s1 + $0x50] sm:$0xff] }
   0x5   :  { %576 = vmatpush3.bf16.msra.mxu0 %v118_v3  ;;  %v122_v16 = vpack.c.bf16 %v111_v14, %v110_v13  ;;  %v113_v17 = vld [vmem:[%s872_s1 + $0x58] sm:$0xff]  ;;  %v647_v18 = vld [vmem:[%s874_s3] sm:$0xff]   ;;  %v648_v19 = vld [vmem:[%s874_s3 + $0x8] sm:$0xff]  }
   0x6   :  { %577 = vmatprep.subr.bf16.mxu0 %v119_v5  ;;  %v114_v20 = vld [vmem:[%s872_s1 + $0x60] sm:$0xff]  ;;  %607 = vmatprep.subr.bf16.mxu1 %v647_v18  ;;  %v123_v21 = vpack.c.bf16 %v113_v17, %v112_v15  ;;  %v115_v22 = vld [vmem:[%s872_s1 + $0x68] sm:$0xff]  ;;  %v649_v23 = vld [vmem:[%s874_s3 + $0x10] sm:$0xff]  }
   0x7   :  { %608 = vmatpush3.bf16.msra.mxu1 %v647_v18  ;;  %v124_v24 = vpack.c.bf16 %v115_v22, %v114_v20  ;;  %v116_v25 = vld [vmem:[%s872_s1 + $0x70] sm:$0xff]  ;;  %v117_v26 = vld [vmem:[%s872_s1 + $0x78] sm:$0xff]  ;;  %v651_v29 = vld [vmem:[%s874_s3 + $0x20] sm:$0xff]  }
   0x8   :  { %609 = vmatprep.subr.bf16.mxu1 %v648_v19  ;;  %v650_v27 = vld [vmem:[%s874_s3 + $0x18] sm:$0xff]   ;;  %v125_v28 = vpack.c.bf16 %v117_v26, %v116_v25  ;;  %v652_v30 = vld [vmem:[%s874_s3 + $0x28] sm:$0xff]   ;;  %v641_v32 = vld [vmem:[%s873_s0 + $0x10] sm:$0xff]  }
   0x9   :  { %578 = vmatpush3.bf16.msra.mxu0 %v119_v5  ;;  %v640_v31 = vld [vmem:[%s873_s0 + $0x8] sm:$0xff]   ;;  %v642_v33 = vld [vmem:[%s873_s0 + $0x18] sm:$0xff]   ;;  %v643_v34 = vld [vmem:[%s873_s0 + $0x20] sm:$0xff]  }
   0xa   :  { %579 = vmatprep.subr.bf16.mxu0 %v120_v9  ;;  %v644_v35 = vld [vmem:[%s873_s0 + $0x28] sm:$0xff]   ;;  %v645_v36 = vld [vmem:[%s873_s0 + $0x30] sm:$0xff]   ;;  %v646_v37 = vld [vmem:[%s873_s0 + $0x38] sm:$0xff]  }
   0xb   :  { %610 = vmatpush3.bf16.msra.mxu1 %v648_v19  ;;  %v653_v38 = vld [vmem:[%s874_s3 + $0x30] sm:$0xff]   ;;  %v654_v39 = vld [vmem:[%s874_s3 + $0x38] sm:$0xff]   ;;  %v22_v42 = vld [vmem:[%s875_s2] sm:$0xff] }
   0xc   :  { %611 = vmatprep.subr.bf16.mxu1 %v649_v23  ;;  %v24_v40 = vld [vmem:[%s875_s2 + $0x10] sm:$0xff]  ;;  %v25_v41 = vld [vmem:[%s875_s2 + $0x18] sm:$0xff]  ;;  %v23_v43 = vld [vmem:[%s875_s2 + $0x8] sm:$0xff]  ;;  %v38_v47 = vmul.f32 0.1, %v22_v42 }
   0xd   :  { %580 = vmatpush3.bf16.msra.mxu0 %v120_v9  ;;  %v40_v44 = vmul.f32 0.1, %v24_v40  ;;  %v41_v45 = vmul.f32 0.1, %v25_v41  ;;  %v39_v48 = vmul.f32 0.1, %v23_v43 }
   0xe   :  { %581 = vmatprep.subr.bf16.mxu0 %v121_v12  ;;  %v28_v56 = vld [vmem:[%s875_s2 + $0x30] sm:$0xff]  ;;  %v29_v57 = vld [vmem:[%s875_s2 + $0x38] sm:$0xff]  ;;  %v26_v59 = vld [vmem:[%s875_s2 + $0x20] sm:$0xff] }
   0xf   :  { %612 = vmatpush3.bf16.msra.mxu1 %v649_v23  ;;  %v27_v60 = vld [vmem:[%s875_s2 + $0x28] sm:$0xff]  ;;  %v44_v62 = vmul.f32 0.1, %v28_v56  ;;  %v45_v63 = vmul.f32 0.1, %v29_v57  ;;  %v32_v10 = vld [vmem:[%s875_s2 + $0x50] sm:$0xff] }
  0x10   :  { %613 = vmatprep.subr.bf16.mxu1 %v650_v27  ;;  %v42_v1 = vmul.f32 0.1, %v26_v59  ;;  %v43_v2 = vmul.f32 0.1, %v27_v60  ;;  %v33_v11 = vld [vmem:[%s875_s2 + $0x58] sm:$0xff]  ;;  %v30_v13 = vld [vmem:[%s875_s2 + $0x40] sm:$0xff] }
  0x11   :  { %582 = vmatpush3.bf16.msra.mxu0 %v121_v12  ;;  %v31_v14 = vld [vmem:[%s875_s2 + $0x48] sm:$0xff]  ;;  %v49_v17 = vmul.f32 0.1, %v33_v11  ;;  %v46_v19 = vmul.f32 0.1, %v30_v13 }
  0x12   :  { %583 = vmatprep.subr.bf16.mxu0 %v122_v16  ;;  %v47_v20 = vmul.f32 0.1, %v31_v14 }
  0x13   :  { %614 = vmatpush3.bf16.msra.mxu1 %v650_v27 }
  0x14   :  { %615 = vmatprep.subr.bf16.mxu1 %v651_v29 }
  0x15   :  { %584 = vmatpush3.bf16.msra.mxu0 %v122_v16  ;;  %v48_v16 = vmul.f32 0.1, %v32_v10 }
  0x16   :  { %585 = vmatprep.subr.bf16.mxu0 %v123_v21 }
  0x17   :  { %616 = vmatpush3.bf16.msra.mxu1 %v651_v29  ;;  %v37_v29 = vld [vmem:[%s875_s2 + $0x78] sm:$0xff] }
  0x18   :  { %617 = vmatprep.subr.bf16.mxu1 %v652_v30 }
  0x19   :  { %586 = vmatpush3.bf16.msra.mxu0 %v123_v21 }
  0x1a   :  { %587 = vmatprep.subr.bf16.mxu0 %v124_v24 }
  0x1b   :  { %618 = vmatpush3.bf16.msra.mxu1 %v652_v30 }
  0x1c   :  { %619 = vmatprep.subr.bf16.mxu1 %v653_v38 }
  0x1d   :  { %588 = vmatpush3.bf16.msra.mxu0 %v124_v24 }
  0x1e   :  { %589 = vmatprep.subr.bf16.mxu0 %v125_v28 }
  0x1f   :  { %620 = vmatpush3.bf16.msra.mxu1 %v653_v38 }
  0x20   :  { %621 = vmatprep.subr.bf16.mxu1 %v654_v39 }
  0x21   :  { %590 = vmatpush3.bf16.msra.mxu0 %v125_v28  ;;  %v36_v28 = vld [vmem:[%s875_s2 + $0x70] sm:$0xff] }
  0x23   :  { %622 = vmatpush3.bf16.msra.mxu1 %v654_v39 }
  0x24   :  { %592 = vmatmul.mubr.bf16.vlgmr.msra.gmra.mrb[0].mxu0 %v640_v31  ;;  %v34_v31 = vld [vmem:[%s875_s2 + $0x60] sm:$0xff] }
  0x25   :  { %595 = vmatprep.mubr.bf16.mxu0 %v641_v32  ;;  %v35_v32 = vld [vmem:[%s875_s2 + $0x68] sm:$0xff] }
  0x26   :  { %v51_v38 = vmul.f32 0.1, %v35_v32 }
  0x2c   :  { %596 = vmatmul.mubr.bf16.gmra.mrb[4].mxu0 %v642_v33 }
  0x2d   :  { %599 = vmatprep.mubr.bf16.mxu0 %v643_v34  ;;  %v52_v34 = vmul.f32 0.1, %v36_v28 }
  0x34   :  { %600 = vmatmul.mubr.bf16.gmra.mrb[8].mxu0 %v644_v35  ;;  %v53_v35 = vmul.f32 0.1, %v37_v29 }
  0x35   :  { %603 = vmatprep.mubr.bf16.mxu0 %v645_v36 }
  0x3c   :  { %604 = vmatmul.mubr.bf16.gmra.mrb[12].mxu0 %v646_v37  ;;  %v50_v37 = vmul.f32 0.1, %v34_v31 }
  0xf7   :  { %v593_v46 = vpop.f32.mrb[0].mxu0 }
  0xf8   :  { %v208_v49 = vpop.f32.mrb[1].mxu0  ;;  %v273_v51 = vadd.f32 %v593_v46, %v40_v44 }
  0xf9   :  { %v594_v50 = vpop.f32.mrb[2].mxu0  ;;  %v271_v54 = vadd.f32 %v208_v49, %v38_v47 }
  0xfa   :  { %v274_v52 = vadd.f32 %v594_v50, %v41_v45  ;;  %v211_v53 = vpop.f32.mrb[3].mxu0 }
  0xfb   :  { %v272_v55 = vadd.f32 %v211_v53, %v39_v48 }
  0xfc   :  { %v323_v58 = vpack.c.bf16 %v274_v52, %v273_v51 }
  0xfd   :  { %v322_v61 = vpack.c.bf16 %v272_v55, %v271_v54 }
  0xff   :  { %v597_v0 = vpop.f32.mrb[4].mxu0  ;;  %623 = vmatprep.mubr.bf16.mxu1 %v322_v61 }
 0x100   :  { %v224_v3 = vpop.f32.mrb[5].mxu0  ;;  %624 = vmatmul.mubr.bf16.vlgmr.msra.gmra.mrb[0].mxu1 %v323_v58  ;;  %v277_v5 = vadd.f32 %v597_v0, %v44_v62 }
 0x101   :  { %v598_v4 = vpop.f32.mrb[6].mxu0  ;;  %v275_v8 = vadd.f32 %v224_v3, %v42_v1 }
 0x102   :  { %v278_v6 = vadd.f32 %v598_v4, %v45_v63  ;;  %v227_v7 = vpop.f32.mrb[7].mxu0 }
 0x103   :  { %v276_v9 = vadd.f32 %v227_v7, %v43_v2 }
 0x104   :  { %v325_v12 = vpack.c.bf16 %v278_v6, %v277_v5 }
 0x105   :  { %v324_v15 = vpack.c.bf16 %v276_v9, %v275_v8 }
 0x107   :  { %v601_v18 = vpop.f32.mrb[8].mxu0  ;;  %627 = vmatprep.mubr.bf16.mxu1 %v324_v15 }
 0x108   :  { %v240_v21 = vpop.f32.mrb[9].mxu0  ;;  %628 = vmatmul.mubr.bf16.gmra.mrb[4].mxu1 %v325_v12  ;;  %v281_v23 = vadd.f32 %v601_v18, %v48_v16 }
 0x109   :  { %v602_v22 = vpop.f32.mrb[10].mxu0  ;;  %v279_v26 = vadd.f32 %v240_v21, %v46_v19 }
 0x10a   :  { %v282_v24 = vadd.f32 %v602_v22, %v49_v17  ;;  %v243_v25 = vpop.f32.mrb[11].mxu0 }
 0x10b   :  { %v280_v27 = vadd.f32 %v243_v25, %v47_v20 }
 0x10c   :  { %v327_v30 = vpack.c.bf16 %v282_v24, %v281_v23 }
 0x10d   :  { %v326_v33 = vpack.c.bf16 %v280_v27, %v279_v26 }
 0x10f   :  { %v605_v36 = vpop.f32.mrb[12].mxu0  ;;  %631 = vmatprep.mubr.bf16.mxu1 %v326_v33 }
 0x110   :  { %v256_v39 = vpop.f32.mrb[13].mxu0  ;;  %632 = vmatmul.mubr.bf16.gmra.mrb[8].mxu1 %v327_v30  ;;  %v285_v41 = vadd.f32 %v605_v36, %v52_v34 }
 0x111   :  { %v606_v40 = vpop.f32.mrb[14].mxu0  ;;  %v283_v44 = vadd.f32 %v256_v39, %v50_v37 }
 0x112   :  { %v286_v42 = vadd.f32 %v606_v40, %v53_v35  ;;  %v259_v43 = vpop.f32.mrb[15].mxu0 }
 0x113   :  { %v284_v45 = vadd.f32 %v259_v43, %v51_v38 }
 0x114   :  { %v329_v46 = vpack.c.bf16 %v286_v42, %v285_v41 }
 0x115   :  { %v328_v47 = vpack.c.bf16 %v284_v45, %v283_v44 }
 0x117   :  { %635 = vmatprep.mubr.bf16.mxu1 %v328_v47 }
 0x118   :  { %636 = vmatmul.mubr.bf16.gmra.mrb[12].mxu1 %v329_v46 }
 0x1d3   :  { %v625_v48 = vpop.f32.mrb[0].mxu1 }
 0x1d4   :  { %v493_v49 = vmax.f32 %v625_v48, 0.0  ;;  %v428_v50 = vpop.f32.mrb[1].mxu1 }
 0x1d5   :  { %v491_v51 = vmax.f32 %v428_v50, 0.0  ;;  %v626_v52 = vpop.f32.mrb[2].mxu1 }
 0x1d6   :  { %509 = vst [vmem:[%s876_s4 + $0x10] sm:$0xff] %v493_v49  ;;  %v494_v53 = vmax.f32 %v626_v52, 0.0  ;;  %v431_v54 = vpop.f32.mrb[3].mxu1 }
 0x1d7   :  { %507 = vst [vmem:[%s876_s4] sm:$0xff] %v491_v51  ;;  %v492_v55 = vmax.f32 %v431_v54, 0.0 }
 0x1d8   :  { %510 = vst [vmem:[%s876_s4 + $0x18] sm:$0xff] %v494_v53 }
 0x1d9   :  { %508 = vst [vmem:[%s876_s4 + $0x8] sm:$0xff] %v492_v55 }
 0x1db   :  { %v629_v56 = vpop.f32.mrb[4].mxu1 }
 0x1dc   :  { %v497_v57 = vmax.f32 %v629_v56, 0.0  ;;  %v444_v58 = vpop.f32.mrb[5].mxu1 }
 0x1dd   :  { %v495_v59 = vmax.f32 %v444_v58, 0.0  ;;  %v630_v60 = vpop.f32.mrb[6].mxu1 }
 0x1de   :  { %513 = vst [vmem:[%s876_s4 + $0x30] sm:$0xff] %v497_v57  ;;  %v498_v61 = vmax.f32 %v630_v60, 0.0  ;;  %v447_v62 = vpop.f32.mrb[7].mxu1 }
 0x1df   :  { %511 = vst [vmem:[%s876_s4 + $0x20] sm:$0xff] %v495_v59  ;;  %v496_v63 = vmax.f32 %v447_v62, 0.0 }
 0x1e0   :  { %514 = vst [vmem:[%s876_s4 + $0x38] sm:$0xff] %v498_v61 }
 0x1e1   :  { %512 = vst [vmem:[%s876_s4 + $0x28] sm:$0xff] %v496_v63 }
 0x1e3   :  { %v633_v0 = vpop.f32.mrb[8].mxu1 }
 0x1e4   :  { %v501_v1 = vmax.f32 %v633_v0, 0.0  ;;  %v460_v2 = vpop.f32.mrb[9].mxu1 }
 0x1e5   :  { %v499_v3 = vmax.f32 %v460_v2, 0.0  ;;  %v634_v4 = vpop.f32.mrb[10].mxu1 }
 0x1e6   :  { %517 = vst [vmem:[%s876_s4 + $0x50] sm:$0xff] %v501_v1  ;;  %v502_v5 = vmax.f32 %v634_v4, 0.0  ;;  %v463_v6 = vpop.f32.mrb[11].mxu1 }
 0x1e7   :  { %515 = vst [vmem:[%s876_s4 + $0x40] sm:$0xff] %v499_v3  ;;  %v500_v7 = vmax.f32 %v463_v6, 0.0 }
 0x1e8   :  { %518 = vst [vmem:[%s876_s4 + $0x58] sm:$0xff] %v502_v5 }
 0x1e9   :  { %516 = vst [vmem:[%s876_s4 + $0x48] sm:$0xff] %v500_v7 }
 0x1eb   :  { %v637_v8 = vpop.f32.mrb[12].mxu1 }
 0x1ec   :  { %v505_v9 = vmax.f32 %v637_v8, 0.0  ;;  %v476_v10 = vpop.f32.mrb[13].mxu1 }
 0x1ed   :  { %v503_v11 = vmax.f32 %v476_v10, 0.0  ;;  %v638_v12 = vpop.f32.mrb[14].mxu1 }
 0x1ee   :  { %521 = vst [vmem:[%s876_s4 + $0x70] sm:$0xff] %v505_v9  ;;  %v506_v13 = vmax.f32 %v638_v12, 0.0  ;;  %v479_v14 = vpop.f32.mrb[15].mxu1 }
 0x1ef   :  { %519 = vst [vmem:[%s876_s4 + $0x60] sm:$0xff] %v503_v11  ;;  %v504_v15 = vmax.f32 %v479_v14, 0.0 }
 0x1f0   :  { %522 = vst [vmem:[%s876_s4 + $0x78] sm:$0xff] %v506_v13 }
 0x1f1   :  { %520 = vst [vmem:[%s876_s4 + $0x68] sm:$0xff] %v504_v15 }

</bundles_post_ra>
